<compile_context>
chip_gen: v7x
topology: tpu7x:2x2x1
jax: 0.10.0
libtpu: 0.0.40
codegen_flags: <defaults>
</compile_context>

<pallas_src>
import functools
import math

import numpy as np
import jax
import jax.numpy as jnp
from jax import lax
from jax.experimental import pallas as pl
from jax.experimental.pallas import tpu as pltpu


# --------------------------------------------------------------------------
# Kernel 1: hb = x @ [W | w1 | w2]  (single MXU matmul).
#   h  (bf16)  -> streamed to kernel 2's MXU contraction
#   f12 (f32)  -> the two per-node attention logits
# --------------------------------------------------------------------------
def _proj_kernel(x_ref, waug_ref, h_ref, f12_ref, *, f_out):
    hb = jnp.dot(x_ref[...], waug_ref[...], preferred_element_type=jnp.float32)
    h_ref[...] = hb[:, :f_out].astype(h_ref.dtype)
    f12_ref[...] = hb[:, f_out:]


# --------------------------------------------------------------------------
# Kernel 2: adjacency-masked attention with block-sparse skipping.
#   grid = (row_blocks, kmax); k streams only the NONZERO column blocks of the
#   current row block (scalar-prefetched schedule).  Output ref is the f32
#   accumulator; normalization + ELU deferred to the last k step.
# --------------------------------------------------------------------------
def _masked_attn_kernel(cb_ref, nv_ref, adj_ref, f1_ref, f2t_ref, h_ref,
                        o_ref, rsum_ref, *, alpha, concat, tk, h_resident):
    i = pl.program_id(0)
    k = pl.program_id(1)

    @pl.when(k == 0)
    def _():
        o_ref[...] = jnp.zeros_like(o_ref)
        rsum_ref[...] = jnp.zeros_like(rsum_ref)

    @pl.when(k < nv_ref[i])          # skip padded / all-zero adjacency blocks
    def _():
        # Elementwise chain in f32 (v5e VPU/EUP have no bf16); cast only at
        # the MXU boundary.
        s = f1_ref[...] + f2t_ref[...]               # (tm, tk) broadcast add
        s = jnp.where(s > 0, s, alpha * s)           # LeakyReLU(alpha)
        # TODO(synk): flash-style running row-max before exp for robustness to
        # very negative logits (the torch reference also omits it).
        e = jnp.exp(-s)
        e = jnp.where(adj_ref[...] != 0, e, 0.0)     # adjacency mask (int8)
        # TODO(synk): training-mode dropout on e (eval mode => identity).
        rsum_ref[...] += jnp.sum(e, axis=-1, keepdims=True)
        if h_resident:
            col0 = pl.multiple_of(cb_ref[i, k] * tk, tk)
            h_blk = h_ref[pl.ds(col0, tk), :]        # slice resident h (bf16)
        else:
            h_blk = h_ref[...]
        # bf16-in / f32-accumulate: native MXU fast path on all generations.
        o_ref[...] += jnp.dot(e.astype(jnp.bfloat16), h_blk,
                              preferred_element_type=jnp.float32)

    @pl.when(k == pl.num_programs(1) - 1)
    def _():
        rsum = rsum_ref[...]
        # Guard rows with no edges (incl. padded rows): torch would produce
        # NaN/Inf here; we emit 0 instead.
        inv = jnp.where(rsum > 0, pl.reciprocal(rsum, approx=False), 0.0)
        hp = o_ref[...] * inv
        if concat:  # ELU(alpha=1)
            hp = jnp.where(hp > 0, hp, jnp.exp(jnp.minimum(hp, 0.0)) - 1.0)
        o_ref[...] = hp


# --------------------------------------------------------------------------
# Wrapper helpers.
# --------------------------------------------------------------------------
def _round_up(x, m):
    return ((x + m - 1) // m) * m


def _vmem_budget_bytes():
    """Per-generation scoped-VMEM budget (v5e/v6e 128 MiB, v7x 64 MiB)."""
    cap = 64 * 1024 * 1024  # conservative fallback (safe on every generation)
    try:
        info = pltpu.get_tpu_info()
        cap = int(getattr(info, "vmem_capacity_bytes", cap))
    except Exception:
        pass
    return min(int(cap * 0.70), 100 * 1024 * 1024)


def _plan_tiles(n_pad, f_out, budget):
    # Row tile: multiple of 32 (int8 adj sublane packing); keep >= 2 row steps
    # so the "parallel" axis can shard across both TensorCores on v7x.
    tm = n_pad
    for t in (512, 256, 128, 64, 32):
        if t <= n_pad // 2 and n_pad % t == 0:
            tm = t
            break
    # Hold h (bf16) resident in VMEM across the whole grid when it fits.
    h_bytes = n_pad * f_out * 2
    h_resident = 2 * h_bytes <= budget // 4
    # Neighbor (lane) tile: largest candidate whose double-buffered working
    # set stays comfortably inside the scoped-VMEM budget.
    tk = 128
    for t in (4096, 2048, 1024, 512, 256, 128):
        if t > n_pad or n_pad % t:
            continue
        ws = (2 * tm * t              # adj tile (int8), double-buffered
              + 2 * tm * 4            # f1
              + 2 * t * 4             # f2t
              + 2 * tm * f_out * 4    # out (f32, accumulated in place)
              + tm * 4)               # rsum scratch
        ws += 2 * h_bytes if h_resident else 2 * t * f_out * 2
        if ws <= (budget * 3) // 5:
            tk = t
            break
    return tm, tk, h_resident


def sp_graph_attention_forward(x, adj, W, a, *, alpha, concat=True,
                               tm=None, tk=None):
    """x: (N, F_in), adj: (N, N), W: (F_in, F_out), a: (1, 2*F_out) -> (N, F_out)."""
    n, f_in = x.shape
    f_out = W.shape[1]
    assert W.shape == (f_in, f_out)
    assert a.shape == (1, 2 * f_out)
    assert adj.shape == (n, n)

    budget = _vmem_budget_bytes()
    n_pad = _round_up(n, 128)           # lane-aligned adjacency / f2t

    tm_d, tk_d, h_resident = _plan_tiles(n_pad, f_out, budget)
    tm = tm_d if tm is None else tm
    tk = tk_d if tk is None else tk
    assert tm % 32 == 0 and n_pad % tm == 0
    assert tk % 128 == 0 and n_pad % tk == 0

    x = jnp.pad(x.astype(jnp.float32), ((0, n_pad - n), (0, 0)))
    W = W.astype(jnp.float32)
    a = a.astype(jnp.float32)
    a1 = a[:, :f_out]
    a2 = a[:, f_out:]
    # Fold the two attention projections into the main matmul:
    #   f1 = (x @ W) @ a1^T == x @ (W @ a1^T), likewise f2.
    w1 = jnp.sum(W * a1, axis=1, keepdims=True)          # (F_in, 1)
    w2 = jnp.sum(W * a2, axis=1, keepdims=True)          # (F_in, 1)
    w_aug = jnp.concatenate([W, w1, w2], axis=1)          # (F_in, F_out+2)

    # int8 adjacency mask (dominant HBM stream of kernel 2).
    adj_mask = (adj != 0)
    adj_i8 = jnp.pad(adj_mask.astype(jnp.int8), ((0, n_pad - n), (0, n_pad - n)))

    cp = pltpu.CompilerParams(dimension_semantics=("parallel",),
                              vmem_limit_bytes=budget)

    # ---- Kernel 1: h (bf16) + attention logits f12 --------------------------
    h, f12 = pl.pallas_call(
        functools.partial(_proj_kernel, f_out=f_out),
        out_shape=(
            jax.ShapeDtypeStruct((n_pad, f_out), jnp.bfloat16),
            jax.ShapeDtypeStruct((n_pad, 2), jnp.float32),
        ),
        grid_spec=pltpu.PrefetchScalarGridSpec(
            num_scalar_prefetch=0,
            grid=(n_pad // tm,),
            in_specs=[
                pl.BlockSpec((tm, f_in), lambda i: (i, 0)),
                pl.BlockSpec((f_in, f_out + 2), lambda i: (0, 0)),
            ],
            out_specs=[
                pl.BlockSpec((tm, f_out), lambda i: (i, 0)),
                pl.BlockSpec((tm, 2), lambda i: (i, 0)),
            ],
        ),
        compiler_params=cp,
    )(x, w_aug)

    f1 = f12[:, 0:1]                        # (n_pad, 1), sublane-major (rows)
    f2t = f12[:, 1:2].reshape(1, n_pad)     # lane-major so the score is a pure
                                            # broadcast add (tiny relayout).

    # ---- Block-sparse schedule (scalar prefetch) -----------------------------
    n_rb, n_cb = n_pad // tm, n_pad // tk
    adj_np = np.zeros((n_pad, n_pad), dtype=bool)
    adj_np[:n, :n] = np.asarray(jax.device_get(adj_mask))
    blk_nz = adj_np.reshape(n_rb, tm, n_cb, tk).any(axis=(1, 3))   # (n_rb, n_cb)
    nvalid = blk_nz.sum(axis=1).astype(np.int32)
    kmax = max(int(nvalid.max()), 1)
    col_ids = np.zeros((n_rb, kmax), dtype=np.int32)
    for r in range(n_rb):
        nz = np.flatnonzero(blk_nz[r])
        if nz.size:
            col_ids[r, :nz.size] = nz
            col_ids[r, nz.size:] = nz[-1]   # repeat last id => DMA index unchanged
    col_ids = jnp.asarray(col_ids)
    nvalid = jnp.asarray(nvalid)

    if h_resident:
        h_spec = pl.BlockSpec((n_pad, f_out), lambda i, k, cb, nv: (0, 0))
    else:
        h_spec = pl.BlockSpec((tk, f_out), lambda i, k, cb, nv: (cb[i, k], 0))

    # ---- Kernel 2: masked attention + aggregation ----------------------------
    kernel = functools.partial(_masked_attn_kernel, alpha=float(alpha),
                               concat=bool(concat), tk=tk, h_resident=h_resident)
    out = pl.pallas_call(
        kernel,
        out_shape=jax.ShapeDtypeStruct((n_pad, f_out), jnp.float32),
        grid_spec=pltpu.PrefetchScalarGridSpec(
            num_scalar_prefetch=2,
            grid=(n_rb, kmax),
            in_specs=[
                pl.BlockSpec((tm, tk), lambda i, k, cb, nv: (i, cb[i, k])),
                pl.BlockSpec((tm, 1), lambda i, k, cb, nv: (i, 0)),
                pl.BlockSpec((1, tk), lambda i, k, cb, nv: (0, cb[i, k])),
                h_spec,
            ],
            out_specs=pl.BlockSpec((tm, f_out), lambda i, k, cb, nv: (i, 0)),
            scratch_shapes=[pltpu.VMEM((tm, 1), jnp.float32)],   # row sums
        ),
        compiler_params=pltpu.CompilerParams(
            dimension_semantics=("parallel", "arbitrary"),
            vmem_limit_bytes=budget,
        ),
    )(col_ids, nvalid, adj_i8, f1, f2t, h)
    # TODO(synk): batch multiple attention heads so the lane dim is >=128/256
    # (single-head module here, so f_out stays as-is).
    return out[:n]


# --------------------------------------------------------------------------
# Pure-JAX reference mirroring the torch forward (eval mode, f32).
# --------------------------------------------------------------------------
def _reference(x, adj, W, a, alpha, concat=True):
    f_out = W.shape[1]
    hi = lax.Precision.HIGHEST
    h = jnp.dot(x, W, precision=hi)
    f1 = jnp.dot(h, a[0, :f_out], precision=hi)
    f2 = jnp.dot(h, a[0, f_out:], precision=hi)
    s = f1[:, None] + f2[None, :]
    s = jnp.where(s > 0, s, alpha * s)
    e = jnp.where(adj != 0, jnp.exp(-s), 0.0)
    rowsum = jnp.sum(e, axis=1, keepdims=True)
    h_prime = jnp.dot(e, h, precision=hi) / rowsum
    if concat:
        return jnp.where(h_prime > 0, h_prime, jnp.exp(h_prime) - 1.0)
    return h_prime


if __name__ == "__main__":
    key = jax.random.PRNGKey(0)
    k_x, k_adj, k_w, k_a = jax.random.split(key, 4)

    N = 200        # number of nodes (padded to 256 internally)
    F_IN = 48      # in_features
    F_OUT = 32     # out_features
    ALPHA = 0.2    # LeakyReLU negative slope

    x = jax.random.normal(k_x, (N, F_IN), dtype=jnp.float32)

    # Sparse graph: a band (|i-j| <= 6) + random short-range edges + self
    # loops.  Several adjacency blocks are all-zero, so the block-skipping
    # path is exercised; self loops guarantee nonzero row sums (as the torch
    # layer implicitly requires).
    ii = jnp.arange(N)
    dist = jnp.abs(ii[:, None] - ii[None, :])
    band = dist <= 6
    rnd = (jax.random.uniform(k_adj, (N, N)) < 0.05) & (dist <= 32)
    adj = (band | rnd | jnp.eye(N, dtype=bool)).astype(jnp.float32)

    # xavier_normal_ with gain=1.414 (std = gain * sqrt(2 / (fan_in + fan_out)))
    std_w = 1.414 * math.sqrt(2.0 / (F_IN + F_OUT))
    W = std_w * jax.random.normal(k_w, (F_IN, F_OUT), dtype=jnp.float32)
    std_a = 1.414 * math.sqrt(2.0 / (2 * F_OUT + 1))
    a = std_a * jax.random.normal(k_a, (1, 2 * F_OUT), dtype=jnp.float32)

    # Explicit small tiles so the demo exercises multiple row tiles, multiple
    # neighbor blocks, padding (200 -> 256) and block skipping.
    out = sp_graph_attention_forward(x, adj, W, a, alpha=ALPHA, concat=True,
                                     tm=64, tk=128)
    out = jax.block_until_ready(out)
    ref = _reference(x, adj, W, a, ALPHA, concat=True)
    assert out.shape == (N, F_OUT)
    assert bool(jnp.all(jnp.isfinite(out)))
    # bf16 e/h on the MXU (f32 accumulation) => looser tolerance vs f32 ref.
    assert jnp.allclose(out, ref, atol=8e-2, rtol=8e-2), \
        float(jnp.max(jnp.abs(out - ref)))

    # Default (auto-planned) tiles + concat=False branch.
    out2 = jax.block_until_ready(
        sp_graph_attention_forward(x, adj, W, a, alpha=ALPHA, concat=False))
    ref2 = _reference(x, adj, W, a, ALPHA, concat=False)
    assert jnp.allclose(out2, ref2, atol=8e-2, rtol=8e-2), \
        float(jnp.max(jnp.abs(out2 - ref2)))

    print("KERNEL_OK")
</pallas_src>

<mosaic_0001>
module attributes {stable_mosaic.version = 11 : i64} {
  func.func @_proj_kernel(%arg0: i32, %arg1: memref<64x48xf32, #tpu.memory_space<vmem>>, %arg2: memref<48x34xf32, #tpu.memory_space<vmem>>, %arg3: memref<64x32xbf16, #tpu.memory_space<vmem>>, %arg4: memref<64x2xf32, #tpu.memory_space<vmem>>) attributes {dimension_semantics = [#tpu.dimension_semantics<parallel>], iteration_bounds = array<i64: 4>, scalar_prefetch = 0 : i64, scratch_operands = 0 : i64, tpu.core_type = #tpu.core_type<tc>, window_params = [{transform_indices = @transform_0, window_bounds = array<i64: 64, 48>}, {pipeline_mode = #tpu.pipeline_mode<synchronous>, transform_indices = @transform_1, window_bounds = array<i64: 48, 34>}, {transform_indices = @transform_2, window_bounds = array<i64: 64, 32>}, {transform_indices = @transform_3, window_bounds = array<i64: 64, 2>}]} {
    %c0 = arith.constant 0 : index
    %c0_0 = arith.constant 0 : index
    %0 = vector.load %arg1[%c0, %c0_0] : memref<64x48xf32, #tpu.memory_space<vmem>>, vector<64x48xf32>
    %c0_1 = arith.constant 0 : index
    %c0_2 = arith.constant 0 : index
    %1 = vector.load %arg2[%c0_1, %c0_2] : memref<48x34xf32, #tpu.memory_space<vmem>>, vector<48x34xf32>
    %cst = arith.constant dense<0.000000e+00> : vector<64x34xf32>
    %2 = tpu.matmul %0, %1, %cst {dimension_numbers = #tpu.dot_dimension_numbers<[1], [0], [0], [1], [0, 0, 1, 1], [], []>} : vector<64x48xf32>, vector<48x34xf32>, vector<64x34xf32> -> vector<64x34xf32>
    %3 = vector.extract_strided_slice %2 {offsets = [0, 0], sizes = [64, 32], strides = [1, 1]} : vector<64x34xf32> to vector<64x32xf32>
    %4 = arith.truncf %3 : vector<64x32xf32> to vector<64x32xbf16>
    %c0_3 = arith.constant 0 : index
    %c0_4 = arith.constant 0 : index
    %5 = vector.load %arg3[%c0_3, %c0_4] : memref<64x32xbf16, #tpu.memory_space<vmem>>, vector<64x32xbf16>
    tpu.vector_store %arg3[%c0_3, %c0_4], %4 {strides = array<i32>} : memref<64x32xbf16, #tpu.memory_space<vmem>>, vector<64x32xbf16>,
    %6 = vector.extract_strided_slice %2 {offsets = [0, 32], sizes = [64, 2], strides = [1, 1]} : vector<64x34xf32> to vector<64x2xf32>
    %c0_5 = arith.constant 0 : index
    %c0_6 = arith.constant 0 : index
    %7 = vector.load %arg4[%c0_5, %c0_6] : memref<64x2xf32, #tpu.memory_space<vmem>>, vector<64x2xf32>
    tpu.vector_store %arg4[%c0_5, %c0_6], %6 {strides = array<i32>} : memref<64x2xf32, #tpu.memory_space<vmem>>, vector<64x2xf32>,
    return
  }
  func.func @transform_0(%arg0: i32) -> (i32, i32) {
    %c0_i32 = arith.constant 0 : i32
    %c0_i32_0 = arith.constant 0 : i32
    return %arg0, %c0_i32 : i32, i32
  }
  func.func @transform_1(%arg0: i32) -> (i32, i32) {
    %c0_i32 = arith.constant 0 : i32
    %c0_i32_0 = arith.constant 0 : i32
    %c0_i32_1 = arith.constant 0 : i32
    return %c0_i32, %c0_i32_0 : i32, i32
  }
  func.func @transform_2(%arg0: i32) -> (i32, i32) {
    %c0_i32 = arith.constant 0 : i32
    %c0_i32_0 = arith.constant 0 : i32
    return %arg0, %c0_i32 : i32, i32
  }
  func.func @transform_3(%arg0: i32) -> (i32, i32) {
    %c0_i32 = arith.constant 0 : i32
    %c0_i32_0 = arith.constant 0 : i32
    return %arg0, %c0_i32 : i32, i32
  }
}

</mosaic_0001>

<bundles_post_ra>
// kernel: tpu_custom_call.1
= control target key start
LH: loop header
LB: loop body
LE: loop exit
PB: predicated region body
PF: predicated region fallthrough
CT: control target
= control target key end

     0   :  { %s635_s12 = smov 0   ;;  %s705_s0 = inlined_call_operand.vmem [shape: f32[256,48], index: 0, kind: input, shape index: {}]   ;;  %s706_s1 = inlined_call_operand.vmem [shape: f32[48,34], index: 1, kind: input, shape index: {}]   ;;  %s707_s2 = inlined_call_operand.vmem [shape: bf16[256,32], index: 2, kind: output, shape index: {0}]   ;;  %s708_s3 = inlined_call_operand.vmem [shape: f32[256,2], index: 3, kind: output, shape index: {1}]  }
   0x1 LB: > { %s504_s13 = sadd.s32 4294967295, %s612_s12   ;;  %p508_p0 = scmp.ge.s32.totalorder %s612_s12, 1  ;;  %s612_s12 = sphi %s635_s12, %s14_s12  }
   0x2   : > { %p141_p1 = scmp.lt.s32.totalorder %s612_s12, 5 }
   0x4   : > { %p142_p2 = pnand %p508_p0, %p141_p1 }
   0x5   : > { %v196_v0 = vld [vmem:[%s706_s1] sm:$0xff] (!%p142_p2)  ;;  %v197_v1 = vld [vmem:[%s706_s1 + $0x8] sm:$0xff] (!%p142_p2)  ;;  %v198_v2 = vld [vmem:[%s706_s1 + $0x10] sm:$0xff] (!%p142_p2)  ;;  %s509_s20 = sshll.u32 (!%p142_p2), %s504_s13, 3  ;;  %vm202_vm0 = vcmask (!%p142_p2), 392192   ;;  %vm364_vm1 = vcmask (!%p142_p2), 257024  }
   0x6   : > { %145 = sbr.rel (%p142_p2) target bundleno = 361 (0x169), region = 28  ;;  %v579_v3 = vpack.c.bf16 (!%p142_p2), %v197_v1, %v196_v0  ;;  %v199_v4 = vld [vmem:[%s706_s1 + $0x18] sm:$0xff] (!%p142_p2)  ;;  %p171_p3 = scmp.lt.s32.totalorder (!%p142_p2), %s509_s20, 31  ;;  %v200_v6 = vld [vmem:[%s706_s1 + $0x20] sm:$0xff] (!%p142_p2)  ;;  %v201_v7 = vld [vmem:[%s706_s1 + $0x28] sm:$0xff] (!%p142_p2)  ;;  %vm405_vm2 = vcmask (!%p142_p2), 15360  }
   0x7   : > { %v583_v5 = vpack.c.bf16 (!%p142_p2), %v199_v4, %v198_v2  ;;  %v587_v8 = vpack.c.bf16 (!%p142_p2), %v201_v7, %v200_v6  ;;  %s614_s8 = smov (!%p142_p2), 96  }
   0x8   : > { %580 = vmatprep.subr.bf16.mxu0 (!%p142_p2), %v579_v3  ;;  %591 = vmatprep.subr.bf16.mxu1 (!%p142_p2), %v579_v3 }
   0x9   : > { %582 = vmatpush3.bf16.msra.mxu0 (!%p142_p2), %v579_v3  ;;  %594 = vmatpush3.bf16.msra.mxu1 (!%p142_p2), %v579_v3 }
   0xa   : > { %584 = vmatprep.subr.bf16.mxu0 (!%p142_p2), %v583_v5  ;;  %592 = vmatprep.subr.bf16.mxu1 (!%p142_p2), %v583_v5 }
   0xd   : > { %s710_s20 = smov (!%p171_p3, %s509_s20), 31  ;;  %586 = vmatpush3.bf16.msra.mxu0 %v583_v5  ;;  %595 = vmatpush3.bf16.msra.mxu1 %v583_v5 }
   0xe   : > { %s510_s27 = sshll.u32 %s710_s20, 3  ;;  %588 = vmatprep.subr.bf16.mxu0 %v587_v8  ;;  %593 = vmatprep.subr.bf16.mxu1 %v587_v8  ;;  %s512_s4 = sshll.u32 %s710_s20, 2 }
   0xf   : > { %s174_s30 = scalar_lea.vmem %s705_s0, %s510_s27  ;;  %s180_s7 = scalar_lea.vmem %s707_s2, %s512_s4 }
  0x10   : > { %v188_v9 = vld [vmem:[%s174_s30] sm:$0xff]  ;;  %v189_v11 = vld [vmem:[%s174_s30 + $0x8] sm:$0xff]  ;;  %v190_v13 = vld [vmem:[%s174_s30 + $0x10] sm:$0xff]  ;;  %s186_s11 = scalar_lea.vmem %s708_s3, %s510_s27 }
  0x11   : > { %v192_v10 = vld [vmem:[%s174_s30 + $0x20] sm:$0xff]  ;;  %567 = vmatprep.mubr.msk.f32.mxu0 %vm202_vm0, %v188_v9  ;;  %590 = vmatpush3.bf16.msra.mxu0 %v587_v8  ;;  %v193_v12 = vld [vmem:[%s174_s30 + $0x28] sm:$0xff]  ;;  %v194_v14 = vld [vmem:[%s174_s30 + $0x30] sm:$0xff] }
  0x12   : > { %573 = vmatprep.mubr.msk.f32.mxu1 %vm202_vm0, %v192_v10  ;;  %596 = vmatpush3.bf16.msra.mxu1 %v587_v8  ;;  %v191_v15 = vld [vmem:[%s174_s30 + $0x18] sm:$0xff] }
  0x13   : > { %v195_v16 = vld [vmem:[%s174_s30 + $0x38] sm:$0xff] }
  0x14   : > { %568 = vmatmul.mubr.msk.f32.vlgmr.msra.gmra.mrb[0].mxu0 %vm202_vm0, %v189_v11 }
  0x15   : > { %574 = vmatmul.mubr.msk.f32.vlgmr.msra.gmra.mrb[0].mxu1 %vm202_vm0, %v193_v12  ;;  %570 = vmatprep.mubr.msk.f32.mxu0 %vm202_vm0, %v190_v13 }
  0x16   : > { %576 = vmatprep.mubr.msk.f32.mxu1 %vm202_vm0, %v194_v14 }
  0x18   : > { %571 = vmatmul.mubr.msk.f32.gmra.mrb[2].mxu0 %vm202_vm0, %v191_v15 }
  0x19   : > { %577 = vmatmul.mubr.msk.f32.gmra.mrb[2].mxu1 %vm202_vm0, %v195_v16 }
  0xe7   : > { %v569_v17 = vpop.f32.mrb[0].mxu0 }
  0xe8   : > { %v575_v18 = vpop.f32.mrb[0].mxu1  ;;  %v534_v19 = vpack.c.bf16 %v569_v17, %v569_v17  ;;  %383 = vrot.lane.b32.xlu0 %v569_v17, %s614_s8  ;;  %v293_v22 = vpop.f32.mrb[1].mxu0 }
  0xe9   : > { %v538_v20 = vpack.c.bf16 %v575_v18, %v575_v18  ;;  %391 = vrot.lane.b32.xlu1 %v575_v18, %s614_s8  ;;  %v313_v21 = vpop.f32.mrb[1].mxu1  ;;  %v533_v24 = vpack.c.bf16 %v293_v22, %v293_v22 }
  0xea   : > { %v537_v23 = vpack.c.bf16 %v313_v21, %v313_v21  ;;  %366 = vst.msk [vmem:[%s180_s7 + $0x4] sm:$0xf] %vm364_vm1, %v534_v19 }
  0xeb   : > { %370 = vst.msk [vmem:[%s180_s7 + $0x14] sm:$0xf] %vm364_vm1, %v538_v20  ;;  %365 = vst.msk [vmem:[%s180_s7] sm:$0xf] %vm364_vm1, %v533_v24  ;;  %v572_v25 = vpop.f32.mrb[2].mxu0 }
  0xec   : > { %369 = vst.msk [vmem:[%s180_s7 + $0x10] sm:$0xf] %vm364_vm1, %v537_v23  ;;  %v578_v26 = vpop.f32.mrb[2].mxu1  ;;  %v536_v27 = vpack.c.bf16 %v572_v25, %v572_v25  ;;  %381 = vrot.lane.b32.xlu0 %v293_v22, %s614_s8  ;;  %v303_v28 = vpop.f32.mrb[3].mxu0 }
  0xed   : > { %387 = vrot.lane.b32.xlu1 %v572_v25, %s614_s8  ;;  %v540_v29 = vpack.c.bf16 %v578_v26, %v578_v26  ;;  %v323_v30 = vpop.f32.mrb[3].mxu1  ;;  %v535_v31 = vpack.c.bf16 %v303_v28, %v303_v28 }
  0xee   : > { %v539_v32 = vpack.c.bf16 %v323_v30, %v323_v30  ;;  %368 = vst.msk [vmem:[%s180_s7 + $0xc] sm:$0xf] %vm364_vm1, %v536_v27 }
  0xef   : > { %372 = vst.msk [vmem:[%s180_s7 + $0x1c] sm:$0xf] %vm364_vm1, %v540_v29  ;;  %367 = vst.msk [vmem:[%s180_s7 + $0x8] sm:$0xf] %vm364_vm1, %v535_v31 }
  0xf0   : > { %371 = vst.msk [vmem:[%s180_s7 + $0x18] sm:$0xf] %vm364_vm1, %v539_v32  ;;  %389 = vrot.lane.b32.xlu0 %v313_v21, %s614_s8 }
  0xf1   : > { %385 = vrot.lane.b32.xlu1 %v303_v28, %s614_s8 }
  0xf4   : > { %393 = vrot.lane.b32.xlu0 %v323_v30, %s614_s8 }
  0xf5   : > { %395 = vrot.lane.b32.xlu1 %v578_v26, %s614_s8 }
 0x15a   : > { %v384_v34 = vpop.permute.xlu0 %383 }
 0x15b   : > { %v392_v33 = vpop.permute.xlu1 %391  ;;  %407 = vst.msk [vmem:[%s186_s11 + $0x8] sm:$0xff] %vm405_vm2, %v384_v34 }
 0x15c   : > { %411 = vst.msk [vmem:[%s186_s11 + $0x28] sm:$0xff] %vm405_vm2, %v392_v33 }
 0x15e   : > { %v382_v35 = vpop.permute.xlu0 %381 }
 0x15f   : > { %v388_v36 = vpop.permute.xlu1 %387  ;;  %406 = vst.msk [vmem:[%s186_s11] sm:$0xff] %vm405_vm2, %v382_v35 }
 0x160   : > { %409 = vst.msk [vmem:[%s186_s11 + $0x18] sm:$0xff] %vm405_vm2, %v388_v36 }
 0x162   : > { %v390_v37 = vpop.permute.xlu0 %389 }
 0x163   : > { %v386_v38 = vpop.permute.xlu1 %385  ;;  %410 = vst.msk [vmem:[%s186_s11 + $0x20] sm:$0xff] %vm405_vm2, %v390_v37 }
 0x164   : > { %408 = vst.msk [vmem:[%s186_s11 + $0x10] sm:$0xff] %vm405_vm2, %v386_v38 }
 0x166   : > { %v394_v39 = vpop.permute.xlu0 %393 }
 0x167   : > { %v396_v40 = vpop.permute.xlu1 %395  ;;  %412 = vst.msk [vmem:[%s186_s11 + $0x30] sm:$0xff] %vm405_vm2, %v394_v39 }
 0x168   : > { %413 = vst.msk [vmem:[%s186_s11 + $0x38] sm:$0xff] %vm405_vm2, %v396_v40 }
 0x169 PF: > { %s14_s12 = sadd.s32 1, %s612_s12  }
 0x16a   : > { %p11_p4 = scmp.ge.s32.totalorder %s14_s12, 6  }
 0x16c   :  { %13 = sbr.rel (!%p11_p4) target bundleno = 1 (0x1), region = 70 }

</bundles_post_ra>
